<compile_context>
chip_gen: v7x
topology: tpu7x:2x2x1
jax: 0.10.0
libtpu: 0.0.40
codegen_flags: <defaults>
</compile_context>

<pallas_src>
import jax
import jax.numpy as jnp
from jax.experimental import pallas as pl
from jax.experimental.pallas import tpu as pltpu


# ----------------------------------------------------------------------------
# Fused Pallas kernel: feature MLP + dueling head, all in VMEM.
# ----------------------------------------------------------------------------
def dueling_dqn_kernel(x_ref, w1_ref, b1_ref, w2_ref, b2_ref,
                       wva1_ref, bva1_ref, wva2_ref, bva2_ref, q_ref):
    cdt = w1_ref.dtype                       # compute dtype (bf16)
    x = x_ref[...].astype(cdt)               # cast activations in-kernel (VPU)

    # feature layer: Linear(D,128) -> ReLU -> Linear(128,128) -> ReLU
    h1 = jnp.dot(x, w1_ref[...], preferred_element_type=jnp.float32)
    h1 = jnp.maximum(h1 + b1_ref[...], 0.0).astype(cdt)          # f32 epilogue
    h2 = jnp.dot(h1, w2_ref[...], preferred_element_type=jnp.float32)
    h2 = jnp.maximum(h2 + b2_ref[...], 0.0).astype(cdt)

    # fused value||advantage hidden layer: (B,128) x (128,256), 256-lane result
    hva = jnp.dot(h2, wva1_ref[...], preferred_element_type=jnp.float32)
    hva = jnp.maximum(hva + bva1_ref[...], 0.0).astype(cdt)

    # fused block-diagonal output layer: (B,256) x (256,1+A) -> [v | a]
    out2 = jnp.dot(hva, wva2_ref[...], preferred_element_type=jnp.float32)
    out2 = out2 + bva2_ref[...]
    v = out2[:, :1]                          # (B, 1)  value stream
    a = out2[:, 1:]                          # (B, A)  advantage stream

    # qvals = values + (advantages - advantages.mean())
    # NOTE: torch .mean() with no dim = global mean over batch AND actions.
    q_ref[...] = v + (a - jnp.mean(a))


# ----------------------------------------------------------------------------
# Wrapper: single pallas_call, whole arrays as VMEM-resident blocks.
# ----------------------------------------------------------------------------
def dueling_dqn_forward(fused_params, state):
    B = state.shape[0]
    A = fused_params["wva2"].shape[1] - 1
    return pl.pallas_call(
        dueling_dqn_kernel,
        out_shape=jax.ShapeDtypeStruct((B, A), jnp.float32),
        in_specs=[pl.BlockSpec(memory_space=pltpu.MemorySpace.VMEM)] * 9,
        out_specs=pl.BlockSpec(memory_space=pltpu.MemorySpace.VMEM),
    )(state,
      fused_params["w1"], fused_params["b1"],
      fused_params["w2"], fused_params["b2"],
      fused_params["wva1"], fused_params["bva1"],
      fused_params["wva2"], fused_params["bva2"])


# ----------------------------------------------------------------------------
# Init: PyTorch-style Linear init, then fuse the two streams offline.
# ----------------------------------------------------------------------------
def init_params(key, input_dim, output_dim, compute_dtype=jnp.bfloat16):
    D = input_dim[0]
    A = output_dim
    ks = jax.random.split(key, 12)

    def lin(kw, kb, fan_in, fan_out):
        # PyTorch nn.Linear default: U(-1/sqrt(fan_in), 1/sqrt(fan_in)).
        # Stored as (in, out) = torch_weight.T so the kernel does x @ w.
        bound = 1.0 / jnp.sqrt(jnp.float32(fan_in))
        w = jax.random.uniform(kw, (fan_in, fan_out), jnp.float32, -bound, bound)
        b = jax.random.uniform(kb, (fan_out,), jnp.float32, -bound, bound)
        return w, b

    w1, b1 = lin(ks[0], ks[1], D, 128)         # feature layer 1
    w2, b2 = lin(ks[2], ks[3], 128, 128)       # feature layer 2
    wv1, bv1 = lin(ks[4], ks[5], 128, 128)     # value stream hidden
    wv2, bv2 = lin(ks[6], ks[7], 128, 1)       # value stream out
    wa1, ba1 = lin(ks[8], ks[9], 128, 128)     # advantage stream hidden
    wa2, ba2 = lin(ks[10], ks[11], 128, A)     # advantage stream out

    # Fuse the two stream hidden layers into one 256-wide matmul.
    wva1 = jnp.concatenate([wv1, wa1], axis=1)                 # (128, 256)
    bva1 = jnp.concatenate([bv1, ba1], axis=0)                 # (256,)
    # Fuse the two stream output layers into one block-diagonal matmul.
    wva2 = jnp.zeros((256, 1 + A), jnp.float32)
    wva2 = wva2.at[:128, :1].set(wv2).at[128:, 1:].set(wa2)    # (256, 1+A)
    bva2 = jnp.concatenate([bv2, ba2], axis=0)                 # (1+A,)

    cdt = compute_dtype
    fused = {
        "w1": w1.astype(cdt), "b1": b1.reshape(1, -1),
        "w2": w2.astype(cdt), "b2": b2.reshape(1, -1),
        "wva1": wva1.astype(cdt), "bva1": bva1.reshape(1, -1),
        "wva2": wva2.astype(cdt), "bva2": bva2.reshape(1, -1),
    }
    return fused


if __name__ == "__main__":
    # Small shapes consistent with the module: state feature width 4,
    # 6 discrete actions, batch of 2.
    input_dim = (4,)
    output_dim = 6
    batch = 2

    key = jax.random.PRNGKey(0)
    k_params, k_x = jax.random.split(key)
    fused_params = init_params(k_params, input_dim, output_dim)
    state = jax.random.normal(k_x, (batch, input_dim[0]), dtype=jnp.float32)

    qvals = jax.jit(dueling_dqn_forward)(fused_params, state)
    qvals = jax.block_until_ready(qvals)
    assert qvals.shape == (batch, output_dim), qvals.shape
    assert bool(jnp.all(jnp.isfinite(qvals)))
    print("KERNEL_OK")
</pallas_src>

<mosaic_0001>
module attributes {stable_mosaic.version = 11 : i64} {
  func.func @dueling_dqn_kernel(%arg0: memref<2x4xf32, #tpu.memory_space<vmem>>, %arg1: memref<4x128xbf16, #tpu.memory_space<vmem>>, %arg2: memref<1x128xf32, #tpu.memory_space<vmem>>, %arg3: memref<128x128xbf16, #tpu.memory_space<vmem>>, %arg4: memref<1x128xf32, #tpu.memory_space<vmem>>, %arg5: memref<128x256xbf16, #tpu.memory_space<vmem>>, %arg6: memref<1x256xf32, #tpu.memory_space<vmem>>, %arg7: memref<256x7xbf16, #tpu.memory_space<vmem>>, %arg8: memref<1x7xf32, #tpu.memory_space<vmem>>, %arg9: memref<2x6xf32, #tpu.memory_space<vmem>>) attributes {dimension_semantics = [], scalar_prefetch = 0 : i64, scratch_operands = 0 : i64, tpu.core_type = #tpu.core_type<tc>} {
    %c0 = arith.constant 0 : index
    %c0_0 = arith.constant 0 : index
    %0 = vector.load %arg0[%c0, %c0_0] : memref<2x4xf32, #tpu.memory_space<vmem>>, vector<2x4xf32>
    %1 = arith.truncf %0 : vector<2x4xf32> to vector<2x4xbf16>
    %c0_1 = arith.constant 0 : index
    %c0_2 = arith.constant 0 : index
    %2 = vector.load %arg1[%c0_1, %c0_2] : memref<4x128xbf16, #tpu.memory_space<vmem>>, vector<4x128xbf16>
    %cst = arith.constant dense<0.000000e+00> : vector<2x128xf32>
    %3 = tpu.matmul %1, %2, %cst {dimension_numbers = #tpu.dot_dimension_numbers<[1], [0], [0], [1], [0, 0, 1, 1], [], []>} : vector<2x4xbf16>, vector<4x128xbf16>, vector<2x128xf32> -> vector<2x128xf32>
    %c0_3 = arith.constant 0 : index
    %c0_4 = arith.constant 0 : index
    %4 = vector.load %arg2[%c0_3, %c0_4] : memref<1x128xf32, #tpu.memory_space<vmem>>, vector<1x128xf32>
    %5 = vector.broadcast %4 : vector<1x128xf32> to vector<2x128xf32>
    %6 = arith.addf %3, %5 : vector<2x128xf32>
    %cst_5 = arith.constant 0.000000e+00 : f32
    %7 = vector.broadcast %cst_5 : f32 to vector<2x128xf32>
    %8 = arith.maximumf %6, %7 : vector<2x128xf32>
    %9 = arith.truncf %8 : vector<2x128xf32> to vector<2x128xbf16>
    %c0_6 = arith.constant 0 : index
    %c0_7 = arith.constant 0 : index
    %10 = vector.load %arg3[%c0_6, %c0_7] : memref<128x128xbf16, #tpu.memory_space<vmem>>, vector<128x128xbf16>
    %cst_8 = arith.constant dense<0.000000e+00> : vector<2x128xf32>
    %11 = tpu.matmul %9, %10, %cst_8 {dimension_numbers = #tpu.dot_dimension_numbers<[1], [0], [0], [1], [0, 0, 1, 1], [], []>} : vector<2x128xbf16>, vector<128x128xbf16>, vector<2x128xf32> -> vector<2x128xf32>
    %c0_9 = arith.constant 0 : index
    %c0_10 = arith.constant 0 : index
    %12 = vector.load %arg4[%c0_9, %c0_10] : memref<1x128xf32, #tpu.memory_space<vmem>>, vector<1x128xf32>
    %13 = vector.broadcast %12 : vector<1x128xf32> to vector<2x128xf32>
    %14 = arith.addf %11, %13 : vector<2x128xf32>
    %cst_11 = arith.constant 0.000000e+00 : f32
    %15 = vector.broadcast %cst_11 : f32 to vector<2x128xf32>
    %16 = arith.maximumf %14, %15 : vector<2x128xf32>
    %17 = arith.truncf %16 : vector<2x128xf32> to vector<2x128xbf16>
    %c0_12 = arith.constant 0 : index
    %c0_13 = arith.constant 0 : index
    %18 = vector.load %arg5[%c0_12, %c0_13] : memref<128x256xbf16, #tpu.memory_space<vmem>>, vector<128x256xbf16>
    %cst_14 = arith.constant dense<0.000000e+00> : vector<2x256xf32>
    %19 = tpu.matmul %17, %18, %cst_14 {dimension_numbers = #tpu.dot_dimension_numbers<[1], [0], [0], [1], [0, 0, 1, 1], [], []>} : vector<2x128xbf16>, vector<128x256xbf16>, vector<2x256xf32> -> vector<2x256xf32>
    %c0_15 = arith.constant 0 : index
    %c0_16 = arith.constant 0 : index
    %20 = vector.load %arg6[%c0_15, %c0_16] : memref<1x256xf32, #tpu.memory_space<vmem>>, vector<1x256xf32>
    %21 = vector.broadcast %20 : vector<1x256xf32> to vector<2x256xf32>
    %22 = arith.addf %19, %21 : vector<2x256xf32>
    %cst_17 = arith.constant 0.000000e+00 : f32
    %23 = vector.broadcast %cst_17 : f32 to vector<2x256xf32>
    %24 = arith.maximumf %22, %23 : vector<2x256xf32>
    %25 = arith.truncf %24 : vector<2x256xf32> to vector<2x256xbf16>
    %c0_18 = arith.constant 0 : index
    %c0_19 = arith.constant 0 : index
    %26 = vector.load %arg7[%c0_18, %c0_19] : memref<256x7xbf16, #tpu.memory_space<vmem>>, vector<256x7xbf16>
    %cst_20 = arith.constant dense<0.000000e+00> : vector<2x7xf32>
    %27 = tpu.matmul %25, %26, %cst_20 {dimension_numbers = #tpu.dot_dimension_numbers<[1], [0], [0], [1], [0, 0, 1, 1], [], []>} : vector<2x256xbf16>, vector<256x7xbf16>, vector<2x7xf32> -> vector<2x7xf32>
    %c0_21 = arith.constant 0 : index
    %c0_22 = arith.constant 0 : index
    %28 = vector.load %arg8[%c0_21, %c0_22] : memref<1x7xf32, #tpu.memory_space<vmem>>, vector<1x7xf32>
    %29 = vector.broadcast %28 : vector<1x7xf32> to vector<2x7xf32>
    %30 = arith.addf %27, %29 : vector<2x7xf32>
    %31 = vector.extract_strided_slice %30 {offsets = [0, 0], sizes = [2, 1], strides = [1, 1]} : vector<2x7xf32> to vector<2x1xf32>
    %32 = vector.extract_strided_slice %30 {offsets = [0, 1], sizes = [2, 6], strides = [1, 1]} : vector<2x7xf32> to vector<2x6xf32>
    %33 = vector.shape_cast %32 : vector<2x6xf32> to vector<1x2x6xf32>
    %cst_23 = arith.constant dense<0.000000e+00> : vector<1xf32>
    %34 = vector.multi_reduction <add>, %33, %cst_23 [1, 2] : vector<1x2x6xf32> to vector<1xf32>
    %35 = vector.shape_cast %34 : vector<1xf32> to vector<1x1x1xf32>
    %36 = vector.extract %35[0, 0, 0] : f32 from vector<1x1x1xf32>
    %cst_24 = arith.constant 1.200000e+01 : f32
    %37 = arith.divf %36, %cst_24 : f32
    %38 = vector.broadcast %37 : f32 to vector<2x6xf32>
    %39 = arith.subf %32, %38 : vector<2x6xf32>
    %40 = vector.broadcast %31 : vector<2x1xf32> to vector<2x6xf32>
    %41 = arith.addf %40, %39 : vector<2x6xf32>
    %c0_25 = arith.constant 0 : index
    %c0_26 = arith.constant 0 : index
    %42 = vector.load %arg9[%c0_25, %c0_26] : memref<2x6xf32, #tpu.memory_space<vmem>>, vector<2x6xf32>
    tpu.vector_store %arg9[%c0_25, %c0_26], %41 {strides = array<i32>} : memref<2x6xf32, #tpu.memory_space<vmem>>, vector<2x6xf32>,
    return
  }
}

</mosaic_0001>

<bundles_post_ra>
// kernel: dueling_dqn_forward.1
= control target key start
LH: loop header
LB: loop body
LE: loop exit
PB: predicated region body
PF: predicated region fallthrough
CT: control target
= control target key end

     0   :  { %14 = vsyncpa [#allocation3], 0  ;;  %s1003_s0 = inlined_call_operand.vmem [shape: f32[2,4], index: 0, kind: input, shape index: {}]   ;;  %s1004_s1 = inlined_call_operand.vmem [shape: bf16[4,128], index: 1, kind: input, shape index: {}]   ;;  %s1005_s2 = inlined_call_operand.vmem [shape: f32[1,128], index: 2, kind: input, shape index: {}]   ;;  %s1006_s3 = inlined_call_operand.hbm [shape: bf16[128,128], index: 3, kind: input, shape index: {}]   ;;  %s1007_s4 = inlined_call_operand.vmem [shape: f32[1,128], index: 4, kind: input, shape index: {}]   ;;  %s1008_s5 = inlined_call_operand.vmem [shape: bf16[128,256], index: 5, kind: input, shape index: {}]   ;;  %s1009_s6 = inlined_call_operand.vmem [shape: f32[1,256], index: 6, kind: input, shape index: {}]   ;;  %s1010_s7 = inlined_call_operand.vmem [shape: bf16[256,7], index: 7, kind: input, shape index: {}]   ;;  %s1011_s8 = inlined_call_operand.vmem [shape: f32[1,7], index: 8, kind: input, shape index: {}]   ;;  %s1012_s9 = inlined_call_operand.hbm [shape: f32[2,6], index: 9, kind: output, shape index: {}]  }
   0x1   :  { %15 = vsyncpa [#allocation4], 0  ;;  %s805_s30 = smov [#allocation2]   ;;  %s757_s13 = scalar_lea.hbm %s1006_s3, 1024 }
   0x2   :  { %s27_s10 = sshll.u32 %s805_s30, 4  ;;  %p758_p0 = scmp.ne.s32.totalorder %s1006_s3, %s757_s13  ;;  %s28_s10 = int_to_ptr.vmem [resolvable:$true] %s27_s10 }
   0x3   :  { %p761_p1 = scmp.lt.u32.totalorder %s757_s13, %s1006_s3 }
   0x5   :  { %p763_p2 = pnand %p761_p1, %p758_p0 }
   0x7   :  { %766 = shalt.err (!%p763_p2)
}
   0x8   :  { %s767_s18 = scalar_lea.vmem %s28_s10, 1024  ;;  %p772_p4 = scmp.lt.s32.totalorder %s28_s10, %s28_s10 }
   0x9   :  { %p768_p3 = scmp.ne.s32.totalorder %s28_s10, %s767_s18  ;;  %p773_p5 = scmp.lt.s32.totalorder %s767_s18, %s767_s18 }
   0xb   :  { %p774_p6 = por %p773_p5, %p772_p4 }
   0xd   :  { %p775_p7 = pnand %p774_p6, %p768_p3 }
   0xf   :  { %778 = shalt.err (!%p775_p7)
}
  0x10   :  { %s806_s19 = smov 64   ;;  %s807_s20 = smov 4  }
  0x11   :  { %33 = dma.hbm_to_vmem [thread:$0]  %s1006_s3, 1024, %s28_s10, [#allocation3], %s806_s19, %s806_s19, %s807_s20  }
  0x12   :  { %801 = dma.done.wait [#allocation3], 1024  }
  0x13   :  { %802 = vsyncadd [#allocation3], 4294966272  ;;  %v808_v0 = vmov 0.0   ;;  %vm809_vm0 = vmmov 0   ;;  %vm62_vm1 = vcmask 1041408   ;;  %v709_v5 = vld [vmem:[#allocation2] sm:$0xff]   ;;  %v239_v62 = vlaneseq }
  0x14   :  { %671 = vmatprep.subr.bf16.mxu0 %v808_v0  ;;  %673 = vmatprep.mubr.msk.bf16.mxu0 %vm809_vm0, %v808_v0  ;;  %v50_v1 = vld [vmem:[%s1004_s1] sm:$0x3]  ;;  %vm58_vm2 = vcmask 31744   ;;  %v710_v6 = vld [vmem:[#allocation2 + $0x8] sm:$0xff]   ;;  %v711_v7 = vld [vmem:[#allocation2 + $0x10] sm:$0xff]   ;;  %v810_v37 = vmov 0  }
  0x15   :  { %677 = vmatprep.subr.bf16.mxu1 %v808_v0  ;;  %693 = vmatprep.mubr.msk.bf16.mxu1 %vm809_vm0, %v808_v0  ;;  %v48_v2 = vld [vmem:[%s1003_s0] sm:$0x3]  ;;  %v64_v3 = vsel %vm62_vm1, %v50_v1, 0  ;;  %v712_v8 = vld [vmem:[#allocation2 + $0x18] sm:$0xff]   ;;  %v714_v10 = vld [vmem:[#allocation2 + $0x28] sm:$0xff]   ;;  %v240_v63 = vshrl.u32 %v239_v62, 7 }
  0x16   :  { %v49_v4 = vpack.c.bf16 %v48_v2, %v48_v2  ;;  %672 = vmatpush3.bf16.msra.mxu0 %v64_v3  ;;  %678 = vmatpush3.bf16.msra.mxu1 %v709_v5  ;;  %v713_v9 = vld [vmem:[#allocation2 + $0x20] sm:$0xff]   ;;  %v715_v11 = vld [vmem:[#allocation2 + $0x30] sm:$0xff]   ;;  %v716_v12 = vld [vmem:[#allocation2 + $0x38] sm:$0xff]   ;;  %vm553_vm3 = vcmask 41984   ;;  %s812_s22 = smov [#allocation5]  }
  0x17   :  { %679 = vmatprep.subr.bf16.mxu1 %v808_v0  ;;  %v717_v13 = vld [vmem:[%s1008_s5] ss:$8 sps:$4 sm:$0xff]   ;;  %v719_v14 = vld [vmem:[%s1008_s5 + $0x4] ss:$8 sps:$4 sm:$0xff]   ;;  %v722_v15 = vld [vmem:[%s1008_s5 + $0x14] ss:$8 sps:$4 sm:$0xff]   ;;  %707 = vset.pattern.permute.xlu1 %v810_v37 }
  0x18   :  { %329 = vmatprep.subr.bf16.mxu0 %v719_v14  ;;  %v720_v16 = vld [vmem:[%s1008_s5 + $0x10] ss:$8 sps:$4 sm:$0xff]   ;;  %v725_v17 = vld [vmem:[%s1008_s5 + $0x24] ss:$8 sps:$4 sm:$0xff]   ;;  %v723_v18 = vld [vmem:[%s1008_s5 + $0x20] ss:$8 sps:$4 sm:$0xff]   ;;  %708 = vset.pattern.permute.xlu0 %v810_v37 }
  0x19   :  { %674 = vmatmul.mubr.msk.bf16.vlgmr.msra.gmra.mrb[0].mxu0 %vm58_vm2, %v49_v4  ;;  %v728_v19 = vld [vmem:[%s1008_s5 + $0x34] ss:$8 sps:$4 sm:$0xff]   ;;  %v726_v20 = vld [vmem:[%s1008_s5 + $0x30] ss:$8 sps:$4 sm:$0xff]   ;;  %v731_v21 = vld [vmem:[%s1008_s5 + $0x44] ss:$8 sps:$4 sm:$0xff]  }
  0x1a   :  { %680 = vmatpush3.bf16.msra.mxu1 %v710_v6  ;;  %330 = vmatpush1.bf16.msra.mxu0 %v717_v13  ;;  %v729_v22 = vld [vmem:[%s1008_s5 + $0x40] ss:$8 sps:$4 sm:$0xff]   ;;  %v734_v23 = vld [vmem:[%s1008_s5 + $0x54] ss:$8 sps:$4 sm:$0xff]   ;;  %v732_v24 = vld [vmem:[%s1008_s5 + $0x50] ss:$8 sps:$4 sm:$0xff]  }
  0x1b   :  { %681 = vmatprep.subr.bf16.mxu1 %v808_v0  ;;  %331 = vmatprep.subr.bf16.mxu0 %v722_v15  ;;  %v737_v25 = vld [vmem:[%s1008_s5 + $0x64] ss:$8 sps:$4 sm:$0xff]   ;;  %v735_v26 = vld [vmem:[%s1008_s5 + $0x60] ss:$8 sps:$4 sm:$0xff]   ;;  %v740_v35 = vld [vmem:[%s1008_s5 + $0x74] ss:$8 sps:$4 sm:$0xff]  }
  0x1c   :  { %v594_v27 = vld [vmem:[%s1005_s2] ss:$0 sm:$0xff]  ;;  %v738_v36 = vld [vmem:[%s1008_s5 + $0x70] ss:$8 sps:$4 sm:$0xff]   ;;  %361 = vmatprep.mubr.bf16.mxu0 %v810_v37  ;;  %v743_v40 = vld [vmem:[%s1010_s7 + $0x48] sm:$0xff]   ;;  %v245_v2 = vsub.s32 1, %v240_v63 }
  0x1d   :  { %v741_v38 = vld [vmem:[%s1010_s7 + $0x40] sm:$0xff]   ;;  %v744_v41 = vld [vmem:[%s1010_s7 + $0x8] sm:$0xff]   ;;  %v745_v42 = vld [vmem:[%s1010_s7 + $0x50] sm:$0xff]   ;;  %s585_s23 = sshll.u32 %s812_s22, 4  ;;  %s586_s23 = int_to_ptr.vmem [resolvable:$true] %s585_s23 }
  0x1e   :  { %682 = vmatpush3.bf16.msra.mxu1 %v711_v7  ;;  %332 = vmatpush1.bf16.msra.mxu0 %v720_v16  ;;  %v742_v39 = vld [vmem:[%s1010_s7] sm:$0xff]   ;;  %v746_v43 = vld [vmem:[%s1010_s7 + $0x10] sm:$0xff]   ;;  %v747_v44 = vld [vmem:[%s1010_s7 + $0x58] sm:$0xff]   ;;  %s779_s24 = scalar_lea.vmem %s586_s23, 32  ;;  %p784_p9 = scmp.lt.s32.totalorder %s586_s23, %s586_s23 }
  0x1f   :  { %683 = vmatprep.subr.bf16.mxu1 %v808_v0  ;;  %333 = vmatprep.subr.bf16.mxu0 %v725_v17  ;;  %v748_v45 = vld [vmem:[%s1010_s7 + $0x18] sm:$0xff]   ;;  %v749_v46 = vld [vmem:[%s1010_s7 + $0x60] sm:$0xff]   ;;  %v751_v48 = vld [vmem:[%s1010_s7 + $0x68] sm:$0xff]   ;;  %p780_p8 = scmp.ne.s32.totalorder %s586_s23, %s779_s24  ;;  %p785_p10 = scmp.lt.s32.totalorder %s779_s24, %s779_s24 }
  0x20   :  { %v750_v47 = vld [vmem:[%s1010_s7 + $0x20] sm:$0xff]   ;;  %v752_v49 = vld [vmem:[%s1010_s7 + $0x28] sm:$0xff]   ;;  %v753_v58 = vld [vmem:[%s1010_s7 + $0x70] sm:$0xff]  }
  0x21   :  { %v596_v50 = vld [vmem:[%s1007_s4] ss:$0 sm:$0xff]  ;;  %v754_v59 = vld [vmem:[%s1010_s7 + $0x30] sm:$0xff]   ;;  %v755_v60 = vld [vmem:[%s1010_s7 + $0x78] sm:$0xff]   ;;  %p786_p11 = por %p785_p10, %p784_p9 }
  0x22   :  { %684 = vmatpush3.bf16.msra.mxu1 %v712_v8  ;;  %334 = vmatpush1.bf16.msra.mxu0 %v723_v18  ;;  %v756_v61 = vld [vmem:[%s1010_s7 + $0x38] sm:$0xff]   ;;  %v237_v1 = vld [vmem:[%s1009_s6] sm:$0x3]  ;;  %s811_s6 = smov 127  }
  0x23   :  { %685 = vmatprep.subr.bf16.mxu1 %v808_v0  ;;  %335 = vmatprep.subr.bf16.mxu0 %v728_v19  ;;  %v246_v4 = vrot.slane %v237_v1, %v245_v2  ;;  %v621_v16 = vld [vmem:[%s1011_s8] ss:$0 sm:$0xff]  ;;  %p787_p12 = pnand %p786_p11, %p780_p8 }
  0x26   :  { %686 = vmatpush3.bf16.msra.mxu1 %v713_v9  ;;  %336 = vmatpush1.bf16.msra.mxu0 %v726_v20 }
  0x27   :  { %687 = vmatprep.subr.bf16.mxu1 %v808_v0  ;;  %337 = vmatprep.subr.bf16.mxu0 %v731_v21 }
  0x2a   :  { %688 = vmatpush3.bf16.msra.mxu1 %v714_v10  ;;  %338 = vmatpush1.bf16.msra.mxu0 %v729_v22 }
  0x2b   :  { %689 = vmatprep.subr.bf16.mxu1 %v808_v0  ;;  %339 = vmatprep.subr.bf16.mxu0 %v734_v23 }
  0x2e   :  { %690 = vmatpush3.bf16.msra.mxu1 %v715_v11  ;;  %340 = vmatpush1.bf16.msra.mxu0 %v732_v24 }
  0x2f   :  { %691 = vmatprep.subr.bf16.mxu1 %v808_v0  ;;  %341 = vmatprep.subr.bf16.mxu0 %v737_v25  ;;  %v241_v0 = vsub.s32 0, %v240_v63 }
  0x31   :  { %v242_v3 = vrot.slane %v237_v1, %v241_v0 }
  0x32   :  { %692 = vmatpush3.bf16.msra.mxu1 %v716_v12  ;;  %342 = vmatpush1.bf16.msra.mxu0 %v735_v26 }
  0x33   :  { %343 = vmatprep.subr.bf16.mxu0 %v740_v35  ;;  %649 = vmatprep.subr.bf16.mxu1 %v741_v38 }
  0x36   :  { %344 = vmatpush1.bf16.msra.mxu0 %v738_v36 }
  0xec   :  { %v100_v28 = vpop.f32.mrb[0].mxu0 }
  0xed   :  { %v101_v29 = vadd.f32 %v594_v27, %v100_v28  ;;  %v675_v30 = vpop.f32.mrb[1].mxu0 }
  0xee   :  { %v103_v31 = vpop.f32.mrb[2].mxu0 }
  0xef   :  { %v106_v32 = vmax.f32 %v101_v29, 0.0  ;;  %v676_v33 = vpop.f32.mrb[3].mxu0 }
  0xf1   :  { %v107_v34 = vpack.c.bf16 %v106_v32, %v106_v32 }
  0xf3   :  { %694 = vmatmul.mubr.bf16.vlgmr.msra.gmra.mrb[0].mxu1 %v107_v34 }
  0xf4   :  { %650 = vmatpush3.bf16.msra.mxu1 %v742_v39 }
  0xf5   :  { %651 = vmatprep.subr.bf16.mxu1 %v743_v40 }
  0xf8   :  { %652 = vmatpush3.bf16.msra.mxu1 %v744_v41 }
  0xf9   :  { %653 = vmatprep.subr.bf16.mxu1 %v745_v42 }
  0xfc   :  { %654 = vmatpush3.bf16.msra.mxu1 %v746_v43 }
  0xfd   :  { %655 = vmatprep.subr.bf16.mxu1 %v747_v44 }
 0x100   :  { %656 = vmatpush3.bf16.msra.mxu1 %v748_v45 }
 0x101   :  { %657 = vmatprep.subr.bf16.mxu1 %v749_v46 }
 0x104   :  { %658 = vmatpush3.bf16.msra.mxu1 %v750_v47 }
 0x105   :  { %659 = vmatprep.subr.bf16.mxu1 %v751_v48 }
 0x108   :  { %660 = vmatpush3.bf16.msra.mxu1 %v752_v49 }
 0x109   :  { %661 = vmatprep.subr.bf16.mxu1 %v753_v58 }
 0x10c   :  { %662 = vmatpush3.bf16.msra.mxu1 %v754_v59 }
 0x10d   :  { %663 = vmatprep.subr.bf16.mxu1 %v755_v60 }
 0x110   :  { %664 = vmatpush3.bf16.msra.mxu1 %v756_v61 }
 0x1c6   :  { %v213_v51 = vpop.f32.mrb[0].mxu1 }
 0x1c7   :  { %v214_v52 = vadd.f32 %v596_v50, %v213_v51  ;;  %v695_v53 = vpop.f32.mrb[1].mxu1 }
 0x1c8   :  { %v216_v54 = vpop.f32.mrb[2].mxu1 }
 0x1c9   :  { %v219_v55 = vmax.f32 %v214_v52, 0.0  ;;  %v696_v56 = vpop.f32.mrb[3].mxu1 }
 0x1cb   :  { %v220_v57 = vpack.c.bf16 %v219_v55, %v219_v55 }
 0x1cd   :  { %362 = vmatmul.mubr.bf16.vlgmr.msra.gmra.mrb[4].mxu0 %v220_v57 }
 0x2a0   :  { %v363_v5 = vpop.f32.mrb[4].mxu0 }
 0x2a1   :  { %v364_v6 = vadd.f32 %v363_v5, %v242_v3  ;;  %v365_v7 = vpop.f32.mrb[5].mxu0 }
 0x2a2   :  { %v366_v8 = vadd.f32 %v365_v7, %v246_v4  ;;  %v367_v9 = vpop.f32.mrb[6].mxu0 }
 0x2a3   :  { %v370_v10 = vmax.f32 %v364_v6, 0.0  ;;  %v368_v11 = vpop.f32.mrb[7].mxu0 }
 0x2a4   :  { %v371_v12 = vmax.f32 %v366_v8, 0.0 }
 0x2a5   :  { %v372_v14 = vpack.c.bf16 %v370_v10, %v370_v10 }
 0x2a6   :  { %v373_v13 = vpack.c.bf16 %v371_v12, %v371_v12 }
 0x2a8   :  { %541 = vmatprep.mubr.bf16.mxu1 %v373_v13 }
 0x2a9   :  { %542 = vmatmul.mubr.bf16.vlgmr.msra.gmra.mrb[4].mxu1 %v372_v14 }
 0x37c   :  { %v665_v15 = vpop.f32.mrb[4].mxu1 }
 0x37d   :  { %v666_v17 = vpop.f32.mrb[5].mxu1 }
 0x37e   :  { %v667_v18 = vadd.f32 %v666_v17, %v665_v15  ;;  %v668_v19 = vpop.f32.mrb[6].mxu1 }
 0x37f   :  { %v669_v20 = vpop.f32.mrb[7].mxu1 }
 0x380   :  { %v544_v21 = vadd.f32 %v667_v18, %v621_v16 }
 0x382   :  { %570 = vperm.xlu1 %707, %v544_v21   ;;  %550 = vrot.lane.b32.xlu0 %v544_v21, %s811_s6 }
 0x3f4   :  { %v551_v22 = vpop.permute.xlu0 %550 }
 0x3f5   :  { %v554_v23 = vsel %vm553_vm3, %v551_v22, 0.0 }
 0x3f6   :  { %555 = vadd.xlane.f32.xlu0 %v554_v23 }
 0x401   :  { %v571_v33 = vpop.permute.xlu1 %570 }
 0x483   :  { %v556_v24 = vpop.xlane.xlu0 %555 }
 0x484   :  { %v557_v25 = vrot.slane %v556_v24, 4 }
 0x486   :  { %v558_v26 = vadd.f32 %v557_v25, %v556_v24 }
 0x488   :  { %v559_v27 = vrot.slane %v558_v26, 2 }
 0x48a   :  { %v560_v28 = vadd.f32 %v559_v27, %v558_v26 }
 0x48c   :  { %v561_v29 = vrot.slane %v560_v28, 1 }
 0x48e   :  { %v562_v30 = vadd.f32 %v561_v29, %v560_v28 }
 0x490   :  { %697 = vpush %v562_v30 }
 0x4c1   :  { %s698_s8 = spop %697 }
 0x4c2   :  { %s566_s21 = smul.f32 0.083333336, %s698_s8 }
 0x4c4   :  { %v567_v31 = vstv %s566_s21 }
 0x4c5   :  { %v568_v32 = vsub.f32 %v544_v21, %v567_v31 }
 0x4c7   :  { %v573_v34 = vadd.f32 %v571_v33, %v568_v32 }
 0x4c9   :  { %575 = vrot.lane.b32.xlu1 %v573_v34, %s811_s6 }
 0x53b   :  { %v576_v35 = vpop.permute.xlu1 %575 }
 0x53c   :  { %578 = vst.msk [vmem:[#allocation5] sm:$0x3] %vm553_vm3, %v576_v35 }
 0x53d   :  { %790 = shalt.err (!%p787_p12)
}
 0x53e   :  { %s791_s0 = scalar_lea.hbm %s1012_s9, 32 }
 0x53f   :  { %p792_p13 = scmp.ne.s32.totalorder %s1012_s9, %s791_s0  ;;  %p795_p0 = scmp.lt.u32.totalorder %s791_s0, %s1012_s9 }
 0x541   :  { %p797_p1 = pnand %p795_p0, %p792_p13 }
 0x543   :  { %800 = shalt.err (!%p797_p1)
}
 0x544   :  { %588 = dma.vmem_to_hbm [thread:$0]  %s586_s23, 32, %s1012_s9, [#allocation4]  }
 0x545   :  { %803 = dma.done.wait [#allocation4], 32  }
 0x546   :  { %804 = vsyncadd [#allocation4], 4294967264 }
 0x547   :  { %592 = vsyncpa [#allocation3], 1 }
 0x548   :  { %593 = vsyncpa [#allocation4], 1 }

</bundles_post_ra>
